<compile_context>
chip_gen: v5e
topology: v5e:2x2
jax: 0.10.0
libtpu: 0.0.40
codegen_flags: <defaults>
</compile_context>

<pallas_src>
import functools

import numpy as np
import jax
import jax.numpy as jnp
from jax import lax
from jax.experimental import pallas as pl
from jax.experimental.pallas import tpu as pltpu


# ----------------------------- host-side helpers ----------------------------

def _round_up(x, m):
    return (x + m - 1) // m * m


def _pooled_dim(n, k, s):
    """PyTorch avg_pool2d output size with ceil_mode=True, padding=0."""
    out = -(-(n - k) // s) + 1          # ceil((n-k)/s) + 1
    if (out - 1) * s >= n:              # last window must start inside input
        out -= 1
    return out


def _chunk_idxs_by_size(total, chunk):
    """Equivalent of utils.chunk_idxs_by_size."""
    out = []
    s = 0
    while s < total:
        out.append((s, min(s + chunk, total)))
        s += chunk
    return out


def _build_pool_matrix(oh, ow, pool_size, pool_stride, phw_pad, ohw_pad):
    """avg_pool2d(ceil_mode=True, padding=0) as a [phw_pad, ohw_pad] operator.
    ceil_mode divisors (clipped window sizes) are baked in; for pool_size=2
    the entries {1, 0.5, 0.25} are exact in bf16."""
    ph = _pooled_dim(oh, pool_size, pool_stride)
    pw = _pooled_dim(ow, pool_size, pool_stride)
    mat = np.zeros((phw_pad, ohw_pad), dtype=np.float32)
    for i in range(ph):
        hs = i * pool_stride
        he = min(hs + pool_size, oh)
        for j in range(pw):
            ws = j * pool_stride
            we = min(ws + pool_size, ow)
            div = float((he - hs) * (we - ws))
            for r in range(hs, he):
                for c in range(ws, we):
                    mat[i * pw + j, r * ow + c] = 1.0 / div
    return mat, ph, pw


def _extract_patches(x, patch_size, n_pad, ohw_pad, k_pad):
    """NCHW f32 -> bf16 im2col patches flattened to [n_pad*OHW_pad, K_pad].
    Feature order is (c, i, j), matching filters.reshape(F, C*P*P)."""
    n, c, h, w = x.shape
    p = patch_size
    oh, ow = h - p + 1, w - p + 1
    xb = x.astype(jnp.bfloat16)                  # cast before the ~C*P*P expansion
    pat = lax.conv_general_dilated_patches(
        xb, (p, p), (1, 1), "VALID",
        dimension_numbers=("NCHW", "OIHW", "NHWC"))   # [N, OH, OW, C*P*P]
    pat = pat.reshape(n, oh * ow, c * p * p)
    pat = jnp.pad(pat, ((0, n_pad - n),
                        (0, ohw_pad - oh * ow),
                        (0, k_pad - c * p * p)))
    return pat.reshape(n_pad * ohw_pad, k_pad)


def _vmem_estimate(b_tile, ohw_pad, k_pad, f_tile, phw_pad):
    patches = b_tile * ohw_pad * k_pad * 2          # bf16
    weights = k_pad * f_tile * 2                    # bf16
    pool = phw_pad * ohw_pad * 2                    # bf16
    out = b_tile * phw_pad * 2 * f_tile * 4         # f32
    pipeline = 2 * (patches + weights + pool + out)  # double-buffered blocks
    inter = b_tile * ohw_pad * f_tile * (4 + 2 + 2)  # conv f32 + pos/neg bf16
    return pipeline + inter


# ------------------------------ Pallas kernel -------------------------------

def _coatesng_kernel(patches_ref, w_ref, pool_ref, out_ref, *,
                     bias, b_tile, ohw_pad, f_tile):
    # patches_ref: [b_tile*OHW_pad, K_pad]     bf16
    # w_ref:       [K_pad, F_TILE]             bf16
    # pool_ref:    [PHW_pad, OHW_pad]          bf16
    # out_ref:     [b_tile, PHW_pad, 2*F_TILE] f32   ([..., :F_TILE]=pos, rest=neg)
    conv = jnp.dot(patches_ref[...], w_ref[...],
                   preferred_element_type=jnp.float32)    # [b*OHW, F_TILE] f32
    pos = jnp.maximum(conv - bias, 0.0).astype(jnp.bfloat16)
    neg = jnp.maximum(-conv - bias, 0.0).astype(jnp.bfloat16)
    pos = pos.reshape(b_tile, ohw_pad, f_tile)
    neg = neg.reshape(b_tile, ohw_pad, f_tile)
    pool = pool_ref[...]
    # TODO(synk): Kron-factored / strided-slice pooling to shrink this matmul.
    for bi in range(b_tile):                               # b_tile <= 4, static
        out_ref[bi, :, :f_tile] = jnp.dot(pool, pos[bi],
                                          preferred_element_type=jnp.float32)
        out_ref[bi, :, f_tile:] = jnp.dot(pool, neg[bi],
                                          preferred_element_type=jnp.float32)


def _coatesng_forward(patches_flat, w_pad, pool_mat, bias, b_tile, f_tile,
                      ohw_pad, phw_pad, vmem_limit_bytes):
    total_rows, k_pad = patches_flat.shape
    n_pad = total_rows // ohw_pad
    f_pad = w_pad.shape[1]
    n_f_blocks = f_pad // f_tile
    # Grid order: batch outer, filters inner -> patches index_map is
    # f-invariant so the patches block stays VMEM-resident across the filter
    # loop while weight tiles are pipelined.
    grid = (n_pad // b_tile, n_f_blocks)

    kernel = functools.partial(_coatesng_kernel, bias=bias, b_tile=b_tile,
                               ohw_pad=ohw_pad, f_tile=f_tile)

    return pl.pallas_call(
        kernel,
        out_shape=jax.ShapeDtypeStruct((n_pad, phw_pad, 2 * f_pad),
                                       jnp.float32),
        grid_spec=pltpu.PrefetchScalarGridSpec(
            num_scalar_prefetch=0,
            grid=grid,
            in_specs=[
                pl.BlockSpec((b_tile * ohw_pad, k_pad), lambda b, f: (b, 0)),
                pl.BlockSpec((k_pad, f_tile), lambda b, f: (0, f)),
                pl.BlockSpec((phw_pad, ohw_pad), lambda b, f: (0, 0)),
            ],
            out_specs=pl.BlockSpec((b_tile, phw_pad, 2 * f_tile),
                                   lambda b, f: (b, 0, f)),
        ),
        compiler_params=pltpu.CompilerParams(
            dimension_semantics=("parallel", "parallel"),
            vmem_limit_bytes=vmem_limit_bytes),
    )(patches_flat, w_pad, pool_mat)


# ------------------------------- module wrapper ------------------------------

class BasicCoatesNgNetPallas:
    """JAX/Pallas re-implementation of BasicCoatesNgNet.forward."""

    def __init__(self, filters, patch_size=6, in_channels=3, pool_size=2,
                 pool_stride=2, bias=1.0, filter_batch_size=1024):
        self.filters = np.asarray(filters, dtype=np.float32)   # [F, C, P, P]
        self.patch_size = patch_size
        self.in_channels = in_channels
        self.pool_size = pool_size
        self.pool_stride = pool_stride
        self.bias = float(bias)
        self.filter_batch_size = filter_batch_size

    def _torch_channel_order(self, num_filters, f_tile):
        """Map torch output channel -> kernel channel.  Kernel layout per
        filter tile t: [t*2F_TILE, +F_TILE)=pos, [+F_TILE, +2F_TILE)=neg."""
        def col(fi, is_neg):
            t = fi // f_tile
            return t * 2 * f_tile + is_neg * f_tile + (fi % f_tile)
        idx = []
        for start, end in _chunk_idxs_by_size(num_filters,
                                              self.filter_batch_size):
            idx.extend(col(i, 0) for i in range(start, end))
            idx.extend(col(i, 1) for i in range(start, end))
        return np.asarray(idx, dtype=np.int32)

    def __call__(self, x):
        # x: [N, C, H, W] float32 (NCHW, like torch)
        n, c, h, w = x.shape
        p = self.patch_size
        oh, ow = h - p + 1, w - p + 1
        num_filters = self.filters.shape[0]
        k = self.in_channels * p * p

        k_pad = _round_up(k, 128)
        ohw_pad = _round_up(oh * ow, 128)
        ph = _pooled_dim(oh, self.pool_size, self.pool_stride)
        pw = _pooled_dim(ow, self.pool_size, self.pool_stride)
        phw = ph * pw
        phw_pad = _round_up(phw, 8)

        # filter tiling: f_pad is a multiple of 128; f_tile from its divisors.
        f_pad = _round_up(num_filters, 128)
        f_tile = next(t for t in (512, 384, 256, 128) if f_pad % t == 0)
        n_f_blocks = f_pad // f_tile

        # batch tiling: >= 2 total grid steps (v7x megacore), VMEM-budgeted.
        if n >= 8:
            b_tile = 4
        elif n >= 4:
            b_tile = 2
        elif n_f_blocks >= 2:
            b_tile = min(n, 2)
        else:
            b_tile = 1
        while (b_tile > 1 and
               _vmem_estimate(b_tile, ohw_pad, k_pad, f_tile, phw_pad)
               > 40 * 2**20):
            b_tile //= 2
        n_pad = _round_up(n, b_tile)
        est = _vmem_estimate(b_tile, ohw_pad, k_pad, f_tile, phw_pad)
        vmem_limit = int(min(48 * 2**20, max(32 * 2**20, 2 * est)))

        patches = _extract_patches(x, p, n_pad, ohw_pad, k_pad)  # bf16

        pool_np, _, _ = _build_pool_matrix(oh, ow, self.pool_size,
                                           self.pool_stride, phw_pad, ohw_pad)
        pool_mat = jnp.asarray(pool_np, dtype=jnp.bfloat16)

        w_np = np.zeros((k_pad, f_pad), dtype=np.float32)
        w_np[:k, :num_filters] = self.filters.reshape(num_filters, k).T
        w_pad = jnp.asarray(w_np, dtype=jnp.bfloat16)

        raw = _coatesng_forward(patches, w_pad, pool_mat, self.bias, b_tile,
                                f_tile, ohw_pad, phw_pad, vmem_limit)

        # Epilogue: one channel gather (torch per-chunk [pos, neg] ordering,
        # drops filter padding), then one reshape/transpose to NCHW.
        chan_idx = jnp.asarray(self._torch_channel_order(num_filters, f_tile))
        out = jnp.take(raw[:n, :phw, :], chan_idx, axis=-1)      # [N, PHW, 2F]
        out = out.reshape(n, ph, pw, 2 * num_filters).transpose(0, 3, 1, 2)
        return out                                               # [N, 2F, PH, PW]


# ------------------------------ reference check -----------------------------

def _reference(x, filters, patch_size, pool_size, pool_stride, bias):
    """Pure-JAX/numpy reference of the torch forward (f32)."""
    conv = lax.conv_general_dilated(
        jnp.asarray(x, jnp.float32), jnp.asarray(filters, jnp.float32),
        window_strides=(1, 1), padding="VALID",
        dimension_numbers=("NCHW", "OIHW", "NCHW"),
        precision=lax.Precision.HIGHEST)
    pos = jnp.maximum(conv - bias, 0.0)
    neg = jnp.maximum(-conv - bias, 0.0)

    def pool(a):
        a_np = np.asarray(a)
        n, ch, oh, ow = a_np.shape
        ph = _pooled_dim(oh, pool_size, pool_stride)
        pw = _pooled_dim(ow, pool_size, pool_stride)
        out = np.zeros((n, ch, ph, pw), dtype=np.float32)
        for i in range(ph):
            hs, he = i * pool_stride, min(i * pool_stride + pool_size, oh)
            for j in range(pw):
                ws, we = j * pool_stride, min(j * pool_stride + pool_size, ow)
                out[:, :, i, j] = a_np[:, :, hs:he, ws:we].mean(axis=(2, 3))
        return out

    return np.concatenate([pool(pos), pool(neg)], axis=1)


# ----------------------------------- main ------------------------------------

if __name__ == "__main__":
    key = jax.random.PRNGKey(0)
    kx, kf = jax.random.split(key)

    N, C, H, W = 2, 3, 16, 16
    F_FILT, P = 32, 6

    x = jax.random.normal(kx, (N, C, H, W), dtype=jnp.float32)
    filters = np.asarray(
        jax.random.normal(kf, (F_FILT, C, P, P), dtype=jnp.float32))

    net = BasicCoatesNgNetPallas(filters, patch_size=P, in_channels=C,
                                 pool_size=2, pool_stride=2, bias=1.0,
                                 filter_batch_size=1024)

    out = jax.block_until_ready(net(x))
    out_np = np.asarray(out)

    # Tight check vs a reference with bf16-quantized inputs (isolates kernel
    # structure from the intentional bf16 operand quantization).
    x_q = np.asarray(jnp.asarray(x, jnp.bfloat16).astype(jnp.float32))
    f_q = np.asarray(jnp.asarray(filters, jnp.bfloat16).astype(jnp.float32))
    ref_q = _reference(x_q, f_q, P, 2, 2, 1.0)
    assert out_np.shape == ref_q.shape, (out_np.shape, ref_q.shape)
    np.testing.assert_allclose(out_np, ref_q, rtol=1e-2, atol=1e-1)

    # Loose sanity check vs the full-f32 reference (bounds bf16 operand error).
    ref = _reference(np.asarray(x), filters, P, 2, 2, 1.0)
    np.testing.assert_allclose(out_np, ref, rtol=5e-2, atol=5e-1)

    print("KERNEL_OK")
</pallas_src>

<mosaic_0001>
module attributes {stable_mosaic.version = 11 : i64} {
  func.func @_coatesng_kernel(%arg0: i32, %arg1: i32, %arg2: memref<128x128xbf16, #tpu.memory_space<vmem>>, %arg3: memref<128x128xbf16, #tpu.memory_space<vmem>>, %arg4: memref<40x128xbf16, #tpu.memory_space<vmem>>, %arg5: memref<1x40x256xf32, #tpu.memory_space<vmem>>) attributes {dimension_semantics = [#tpu.dimension_semantics<parallel>, #tpu.dimension_semantics<parallel>], iteration_bounds = array<i64: 2, 1>, scalar_prefetch = 0 : i64, scratch_operands = 0 : i64, tpu.core_type = #tpu.core_type<tc>, window_params = [{transform_indices = @transform_0, window_bounds = array<i64: 128, 128>}, {transform_indices = @transform_1, window_bounds = array<i64: 128, 128>}, {pipeline_mode = #tpu.pipeline_mode<synchronous>, transform_indices = @transform_2, window_bounds = array<i64: 40, 128>}, {transform_indices = @transform_3, window_bounds = array<i64: 1, 40, 256>}]} {
    %c0 = arith.constant 0 : index
    %c0_0 = arith.constant 0 : index
    %0 = vector.load %arg2[%c0, %c0_0] : memref<128x128xbf16, #tpu.memory_space<vmem>>, vector<128x128xbf16>
    %c0_1 = arith.constant 0 : index
    %c0_2 = arith.constant 0 : index
    %1 = vector.load %arg3[%c0_1, %c0_2] : memref<128x128xbf16, #tpu.memory_space<vmem>>, vector<128x128xbf16>
    %cst = arith.constant dense<0.000000e+00> : vector<128x128xf32>
    %2 = tpu.matmul %0, %1, %cst {dimension_numbers = #tpu.dot_dimension_numbers<[1], [0], [0], [1], [0, 0, 1, 1], [], []>} : vector<128x128xbf16>, vector<128x128xbf16>, vector<128x128xf32> -> vector<128x128xf32>
    %cst_3 = arith.constant 1.000000e+00 : f32
    %3 = vector.broadcast %cst_3 : f32 to vector<128x128xf32>
    %4 = arith.subf %2, %3 : vector<128x128xf32>
    %cst_4 = arith.constant 0.000000e+00 : f32
    %5 = vector.broadcast %cst_4 : f32 to vector<128x128xf32>
    %6 = arith.maximumf %4, %5 : vector<128x128xf32>
    %7 = arith.truncf %6 : vector<128x128xf32> to vector<128x128xbf16>
    %cst_5 = arith.constant 0.000000e+00 : f32
    %8 = vector.broadcast %cst_5 : f32 to vector<128x128xf32>
    %9 = arith.subf %8, %2 : vector<128x128xf32>
    %cst_6 = arith.constant 1.000000e+00 : f32
    %10 = vector.broadcast %cst_6 : f32 to vector<128x128xf32>
    %11 = arith.subf %9, %10 : vector<128x128xf32>
    %cst_7 = arith.constant 0.000000e+00 : f32
    %12 = vector.broadcast %cst_7 : f32 to vector<128x128xf32>
    %13 = arith.maximumf %11, %12 : vector<128x128xf32>
    %14 = arith.truncf %13 : vector<128x128xf32> to vector<128x128xbf16>
    %15 = vector.shape_cast %7 : vector<128x128xbf16> to vector<1x128x128xbf16>
    %16 = vector.shape_cast %14 : vector<128x128xbf16> to vector<1x128x128xbf16>
    %c0_8 = arith.constant 0 : index
    %c0_9 = arith.constant 0 : index
    %17 = vector.load %arg4[%c0_8, %c0_9] : memref<40x128xbf16, #tpu.memory_space<vmem>>, vector<40x128xbf16>
    %18 = vector.shape_cast %15 : vector<1x128x128xbf16> to vector<128x128xbf16>
    %cst_10 = arith.constant dense<0.000000e+00> : vector<40x128xf32>
    %19 = tpu.matmul %17, %18, %cst_10 {dimension_numbers = #tpu.dot_dimension_numbers<[1], [0], [0], [1], [0, 0, 1, 1], [], []>} : vector<40x128xbf16>, vector<128x128xbf16>, vector<40x128xf32> -> vector<40x128xf32>
    %c0_11 = arith.constant 0 : index
    %c0_12 = arith.constant 0 : index
    %c0_13 = arith.constant 0 : index
    %20 = vector.load %arg5[%c0_11, %c0_12, %c0_13] : memref<1x40x256xf32, #tpu.memory_space<vmem>>, vector<1x40x128xf32>
    %21 = vector.shape_cast %20 : vector<1x40x128xf32> to vector<40x128xf32>
    %22 = vector.shape_cast %19 : vector<40x128xf32> to vector<1x40x128xf32>
    tpu.vector_store %arg5[%c0_11, %c0_12, %c0_13], %22 {strides = array<i32>} : memref<1x40x256xf32, #tpu.memory_space<vmem>>, vector<1x40x128xf32>,
    %23 = vector.shape_cast %16 : vector<1x128x128xbf16> to vector<128x128xbf16>
    %cst_14 = arith.constant dense<0.000000e+00> : vector<40x128xf32>
    %24 = tpu.matmul %17, %23, %cst_14 {dimension_numbers = #tpu.dot_dimension_numbers<[1], [0], [0], [1], [0, 0, 1, 1], [], []>} : vector<40x128xbf16>, vector<128x128xbf16>, vector<40x128xf32> -> vector<40x128xf32>
    %c0_15 = arith.constant 0 : index
    %c0_16 = arith.constant 0 : index
    %c128 = arith.constant 128 : index
    %25 = vector.load %arg5[%c0_15, %c0_16, %c128] : memref<1x40x256xf32, #tpu.memory_space<vmem>>, vector<1x40x128xf32>
    %26 = vector.shape_cast %25 : vector<1x40x128xf32> to vector<40x128xf32>
    %27 = vector.shape_cast %24 : vector<40x128xf32> to vector<1x40x128xf32>
    tpu.vector_store %arg5[%c0_15, %c0_16, %c128], %27 {strides = array<i32>} : memref<1x40x256xf32, #tpu.memory_space<vmem>>, vector<1x40x128xf32>,
    return
  }
  func.func @transform_0(%arg0: i32, %arg1: i32) -> (i32, i32) {
    %c0_i32 = arith.constant 0 : i32
    %c0_i32_0 = arith.constant 0 : i32
    return %arg0, %c0_i32 : i32, i32
  }
  func.func @transform_1(%arg0: i32, %arg1: i32) -> (i32, i32) {
    %c0_i32 = arith.constant 0 : i32
    %c0_i32_0 = arith.constant 0 : i32
    return %c0_i32, %arg1 : i32, i32
  }
  func.func @transform_2(%arg0: i32, %arg1: i32) -> (i32, i32) {
    %c0_i32 = arith.constant 0 : i32
    %c0_i32_0 = arith.constant 0 : i32
    %c0_i32_1 = arith.constant 0 : i32
    return %c0_i32, %c0_i32_0 : i32, i32
  }
  func.func @transform_3(%arg0: i32, %arg1: i32) -> (i32, i32, i32) {
    %c0_i32 = arith.constant 0 : i32
    %c0_i32_0 = arith.constant 0 : i32
    return %arg0, %c0_i32, %arg1 : i32, i32, i32
  }
}

</mosaic_0001>

<bundles_post_ra>
// kernel: tpu_custom_call.1
= control target key start
LH: loop header
LB: loop body
LE: loop exit
PB: predicated region body
PF: predicated region fallthrough
CT: control target
= control target key end

     0   :  { %8 = vsyncpa [#allocation3], 0  ;;  %s1350_s0 = inlined_call_operand.hbm [shape: bf16[256,128], index: 0, kind: input, shape index: {}]   ;;  %s1351_s1 = inlined_call_operand.hbm [shape: bf16[128,128], index: 1, kind: input, shape index: {}]   ;;  %s1352_s2 = inlined_call_operand.hbm [shape: bf16[40,128], index: 2, kind: input, shape index: {}]   ;;  %s1353_s3 = inlined_call_operand.hbm [shape: f32[2,40,256], index: 3, kind: output, shape index: {}]  }
   0x1   :  { %10 = vsyncpa [#allocation3 + $0x1], 0 }
   0x2   :  { %11 = vsyncpa [#allocation6], 0 }
   0x3   :  { %12 = vsyncpa [#allocation4], 0 }
   0x4   :  { %14 = vsyncpa [#allocation4 + $0x1], 0  ;;  %s1160_s12 = smov 0   ;;  %s1162_s13 = smov 0  }
   0x5   :  { %s1164_s14 = smov 0   ;;  %s1166_s15 = smov 0  }
   0x6   :  { %s1168_s16 = smov 0   ;;  %s1170_s17 = smov 0  }
   0x7 LB: > { %s720_s18 = sadd.s32 4294967295, %s1132_s17   ;;  %s721_s19 = sadd.s32 4294967294, %s1132_s17   ;;  %s1132_s17 = sphi %s1170_s17, %s20_s17   ;;  %s1128_s16 = sphi %s1168_s16, %s1363_s16   ;;  %s1124_s15 = sphi %s1166_s15, %s1362_s15   ;;  %s1120_s14 = sphi %s1164_s14, %s1361_s14   ;;  %s1116_s13 = sphi %s1162_s13, %s1360_s13   ;;  %s1112_s12 = sphi %s1160_s12, %s1359_s12  }
   0x8   : > { %p52_p0 = scmp.ne.s32.totalorder %s1116_s13, %s1112_s12  ;;  %p1196_p1 = scmp.eq.s32.totalorder %s720_s18, 0 }
   0x9   : > { %p131_p2 = scmp.eq.s32.totalorder %s721_s19, 1  ;;  %p722_p4 = scmp.ge.s32.totalorder %s1132_s17, 1 }
   0xa   : > { %p1202_p3 = por %p1196_p1, %p52_p0  ;;  %p138_p6 = scmp.lt.s32.totalorder %s1132_s17, 3 }
   0xb   : > { %p1207_p5 = por %p131_p2, %p52_p0  ;;  %s151_s25 = sshll.u32 %s1351_s1, 4  ;;  %s152_s25 = int_to_ptr.hbm [resolvable:$true] %s151_s25 }
   0xc   : > { %p1215_p7 = pnand %p722_p4, %p138_p6  ;;  %s1134_s27 = smov [#allocation5]  }
   0xd   : > { %s153_s28 = sshll.u32 %s1134_s27, 4  ;;  %p725_p10 = scmp.ge.s32.totalorder %s1132_s17, 2  ;;  %s154_s28 = int_to_ptr.vmem [resolvable:$true] %s153_s28 }
   0xe   : > { %p881_p8 = pneg %p1215_p7  ;;  %s165_s4 = sshll.u32 %s1352_s2, 4  ;;  %s166_s4 = int_to_ptr.hbm [resolvable:$true] %s165_s4 }
   0xf   : > { %s1135_s5 = smov 64   ;;  %s1136_s6 = smov 4  }
  0x10   : > { %p882_p9 = pnand %p881_p8, %p1196_p1  ;;  %s1137_s7 = smov [#allocation7]  }
  0x11   : > { %s167_s8 = sshll.u32 %s1137_s7, 4  ;;  %p125_p11 = scmp.eq.s32.totalorder %s720_s18, 1  ;;  %s168_s8 = int_to_ptr.vmem [resolvable:$true] %s167_s8 }
  0x12   : > { %884 = dma.hbm_to_vmem [thread:$0]  (!%p882_p9), %s152_s25, 1024, %s154_s28, [#allocation6], %s1135_s5, %s1135_s5, %s1136_s6  }
  0x13   : > { %887 = dma.hbm_to_vmem [thread:$0]  (!%p882_p9), %s166_s4, 320, %s168_s8, [#allocation6], %s1135_s5, %s1135_s5, %s1136_s6  }
  0x14   : > { %s32_s9 = sadd.s32 1, %s1128_s16  ;;  %s39_s10 = sadd.s32 1, %s1120_s14 }
  0x15   : > { %p34_p12 = scmp.ge.s32.totalorder %s32_s9, 2  ;;  %p46_p13 = scmp.ne.s32.totalorder %s1120_s14, %s1116_s13 }
  0x16   : > { %p47_p0 = scmp.eq.s32.totalorder %s1132_s17, 0  ;;  %p898_p4 = scmp.lt.s32.totalorder %s1132_s17, 2 }
  0x17   : > { %s1365_s9 = smov (%p34_p12, %s32_s9), 0  ;;  %p1242_p2 = por %p125_p11, %p46_p13 }
  0x18   : > { %s36_s19 = ssub.s32 %s1128_s16, %s1365_s9  ;;  %s181_s23 = sand.u32 1, %s1120_s14  }
  0x19   : > { %p37_p6 = scmp.eq.s32.totalorder %s36_s19, 0  ;;  %p48_p8 = por %p47_p0, %p46_p13 }
  0x1a   : > { %s726_s24 = sshll.u32 %s181_s23, 6  ;;  %s840_s18 = sshll.u32 %s1128_s16, 6 }
  0x1b   : > { %s1252_s25 = scalar_select %p37_p6, %s1120_s14, %s39_s10  }
  0x1c   : > { %s190_s29 = scalar_lea.hbm %s1350_s0, %s840_s18  ;;  %s185_s4 = scalar_lea.vmem [#allocation2], %s726_s24 }
  0x1d   : > { %s191_s30 = sshll.u32 %s190_s29, 4  ;;  %s193_s7 = sshll.u32 %s185_s4, 4  ;;  %s192_s30 = int_to_ptr.hbm [resolvable:$true] %s191_s30  ;;  %s194_s7 = int_to_ptr.vmem [resolvable:$true] %s193_s7 }
  0x1e   : > { %p889_p9 = pnand %p898_p4, %p48_p8  ;;  %s182_s8 = scalar_lea.sflag [#allocation3], %s181_s23 }
  0x1f   : > { %205 = sbr.rel (%p1215_p7) target bundleno = 470 (0x1d6), region = 32  ;;  %s1265_s10 = sand.u32 (!%p1215_p7), 1, %s1116_s13  }
  0x20   : > { %891 = dma.hbm_to_vmem [thread:$0]  (!%p889_p9), %s192_s30, 1024, %s194_s7, %s182_s8, %s1135_s5, %s1135_s5, %s1136_s6  }
  0x21   : > { %s730_s19 = sshll.u32 (!%p1215_p7), %s1265_s10, 6  ;;  %s208_s24 = scalar_lea.sflag (!%p1215_p7), [#allocation3], %s1265_s10 }
  0x22   : > { %s1269_s18 = scalar_lea.vmem (!%p1215_p7), [#allocation2], %s730_s19 }
  0x24   : > { %1099 = dma.done.wait (%p1202_p3), %s208_s24, 1024  }
  0x25   : > { %1101 = vsyncadd (%p1202_p3), %s208_s24, 4294966272 }
  0x26   : > { %1103 = dma.done.wait (%p1196_p1), [#allocation6], 1344  }
  0x27   : > { %1105 = vsyncadd (%p1196_p1), [#allocation6], 4294965952  ;;  %v856_v0 = vld [vmem:[#allocation5 + $0x38] sm:$0xff]  ;;  %v855_v1 = vld [vmem:[#allocation5 + $0x30] sm:$0xff]  ;;  %s867_s20 = smul.u32 80, %s1265_s10  ;;  %s598_s29 = scalar_lea.sflag [#allocation4], %s1265_s10 }
  0x28   : > { %859 = vmatpush.bf16.msra.mxu3 %v856_v0  ;;  %375 = vmatpush.bf16.msra.mxu0 %v856_v0  ;;  %v854_v2 = vld [vmem:[#allocation5 + $0x28] sm:$0xff]  ;;  %v853_v3 = vld [vmem:[#allocation5 + $0x20] sm:$0xff]  ;;  %v852_v4 = vld [vmem:[#allocation5 + $0x18] sm:$0xff]  ;;  %s868_s26 = smul.u32 80, %s1124_s15  ;;  %s1066_s8 = scalar_lea.hbm %s1353_s3, 160 }
  0x29   : > { %v851_v5 = vld [vmem:[#allocation5 + $0x10] sm:$0xff]  ;;  %v850_v6 = vld [vmem:[#allocation5 + $0x8] sm:$0xff]  ;;  %v849_v7 = vld [vmem:[#allocation5] sm:$0xff]  ;;  %s244_s21 = scalar_lea.vmem [#allocation8], %s867_s20 }
  0x2a   : > { %v845_v8 = vld [vmem:[%s1269_s18 + $0x20] sm:$0xff]  ;;  %v846_v10 = vld [vmem:[%s1269_s18 + $0x28] sm:$0xff]  ;;  %v847_v12 = vld [vmem:[%s1269_s18 + $0x30] sm:$0xff]  ;;  %s611_s23 = scalar_lea.hbm %s1353_s3, %s868_s26  ;;  %s612_s27 = sshll.u32 %s244_s21, 4  ;;  %s613_s27 = int_to_ptr.vmem [resolvable:$true] %s612_s27 }
  0x2b   : > { %v841_v9 = vld [vmem:[%s1269_s18] sm:$0xff]  ;;  %v842_v11 = vld [vmem:[%s1269_s18 + $0x8] sm:$0xff]  ;;  %v843_v13 = vld [vmem:[%s1269_s18 + $0x10] sm:$0xff]  ;;  %s614_s28 = sshll.u32 %s611_s23, 4  ;;  %s615_s28 = int_to_ptr.hbm [resolvable:$true] %s614_s28 }
  0x2c   : > { %860 = vmatpush.bf16.msra.mxu3 %v855_v1  ;;  %376 = vmatpush.bf16.msra.mxu0 %v855_v1  ;;  %v848_v14 = vld [vmem:[%s1269_s18 + $0x38] sm:$0xff]  ;;  %s1060_s30 = sshra.s32 %s615_s28, 4  ;;  %s1061_s30 = int_to_ptr.hbm [resolvable:$true] %s1060_s30 }
  0x2d   : > { %v844_v15 = vld [vmem:[%s1269_s18 + $0x18] sm:$0xff]  ;;  %s1062_s15 = scalar_lea.hbm %s1061_s30, 80  ;;  %p1067_p11 = scmp.lt.s32.totalorder %s1061_s30, %s1353_s3 }
  0x2e   : > { %p1063_p1 = scmp.ne.s32.totalorder %s1061_s30, %s1062_s15  ;;  %p1068_p12 = scmp.lt.s32.totalorder %s1066_s8, %s1062_s15 }
  0x30   : > { %861 = vmatpush.bf16.msra.mxu3 %v854_v2  ;;  %377 = vmatpush.bf16.msra.mxu0 %v854_v2  ;;  %p1064_p3 = pnand %p1063_p1, %p1242_p2  ;;  %p1069_p13 = por %p1068_p12, %p1067_p11 }
  0x32   : > { %p1065_p7 = pneg %p1064_p3 }
  0x34   : > { %862 = vmatpush.bf16.msra.mxu3 %v853_v3  ;;  %378 = vmatpush.bf16.msra.mxu0 %v853_v3  ;;  %p1070_p0 = pnand %p1069_p13, %p1065_p7 }
  0x38   : > { %863 = vmatpush.bf16.msra.mxu3 %v852_v4  ;;  %379 = vmatpush.bf16.msra.mxu0 %v852_v4 }
  0x3c   : > { %864 = vmatpush.bf16.msra.mxu3 %v851_v5  ;;  %380 = vmatpush.bf16.msra.mxu0 %v851_v5 }
  0x40   : > { %865 = vmatpush.bf16.msra.mxu3 %v850_v6  ;;  %381 = vmatpush.bf16.msra.mxu0 %v850_v6 }
  0x44   : > { %866 = vmatpush.bf16.msra.mxu3 %v849_v7  ;;  %382 = vmatpush.bf16.msra.mxu0 %v849_v7 }
  0x47   : > { %403 = vmatmul.bf16.vlgmr.msra.gmra.mxu3 %v845_v8  ;;  %383 = vmatmul.bf16.vlgmr.msra.gmra.mxu0 %v841_v9 }
  0x57   : > { %408 = vmatmul.bf16.gmra.mxu3 %v846_v10  ;;  %388 = vmatmul.bf16.gmra.mxu0 %v842_v11 }
  0x67   : > { %413 = vmatmul.bf16.gmra.mxu3 %v847_v12  ;;  %393 = vmatmul.bf16.gmra.mxu0 %v843_v13 }
  0x77   : > { %418 = vmatmul.bf16.gmra.mxu3 %v848_v14  ;;  %398 = vmatmul.bf16.gmra.mxu0 %v844_v15 }
  0xc4   : > { %v1287_v16 = vpop.f32.mrf.mxu0 }
  0xca   : > { %v404_v17 = vpop.f32.mrf.mxu3 }
  0xcb   : > { %v472_v58 = vsub.f32 0.0, %v404_v17  ;;  %v805_v1 = vadd.f32 -1.0, %v404_v17 }
  0xcc   : > { %v1289_v18 = vpop.f32.mrf.mxu0 }
  0xcd   : > { %v821_v8 = vadd.f32 -1.0, %v472_v58  ;;  %v448_v14 = vmax.f32 %v805_v1, 0.0  ;;  %v858_v1 = vld [vmem:[#allocation7 + $0x8] sm:$0xff] }
  0xd2   : > { %v406_v19 = vpop.f32.mrf.mxu3 }
  0xd3   : > { %v473_v52 = vsub.f32 0.0, %v406_v19  ;;  %v806_v59 = vadd.f32 -1.0, %v406_v19 }
  0xd4   : > { %v1291_v20 = vpop.f32.mrf.mxu0 }
  0xd5   : > { %v822_v2 = vadd.f32 -1.0, %v473_v52  ;;  %v449_v9 = vmax.f32 %v806_v59, 0.0 }
  0xd7   : > { %v505_v15 = vmax.f32 %v822_v2, 0.0  ;;  %v524_v2 = vld [vmem:[#allocation7 + $0x10] sm:$0xf] }
  0xda   : > { %v409_v21 = vpop.f32.mrf.mxu3 }
  0xdb   : > { %v474_v45 = vsub.f32 0.0, %v409_v21  ;;  %v807_v53 = vadd.f32 -1.0, %v409_v21 }
  0xdc   : > { %v1293_v23 = vpop.f32.mrf.mxu0 }
  0xdd   : > { %v823_v61 = vadd.f32 -1.0, %v474_v45  ;;  %v450_v3 = vmax.f32 %v807_v53, 0.0 }
  0xdf   : > { %v506_v10 = vmax.f32 %v823_v61, 0.0 }
  0xe2   : > { %v411_v22 = vpop.f32.mrf.mxu3 }
  0xe3   : > { %v475_v39 = vsub.f32 0.0, %v411_v22  ;;  %v808_v46 = vadd.f32 -1.0, %v411_v22 }
  0xe4   : > { %v1295_v25 = vpop.f32.mrf.mxu0 }
  0xe5   : > { %v824_v54 = vadd.f32 -1.0, %v475_v39  ;;  %v451_v62 = vmax.f32 %v808_v46, 0.0  ;;  %v468_v19 = vsub.f32 0.0, %v1295_v25 }
  0xe7   : > { %v507_v4 = vmax.f32 %v824_v54, 0.0  ;;  %v461_v13 = vpack.c.bf16 %v451_v62, %v450_v3  ;;  %v534_v3 = vunpack.c.l.b16 %v524_v2 }
  0xea   : > { %v414_v24 = vpop.f32.mrf.mxu3 }
  0xeb   : > { %v476_v33 = vsub.f32 0.0, %v414_v24  ;;  %v809_v40 = vadd.f32 -1.0, %v414_v24  ;;  %v517_v24 = vpack.c.bf16 %v507_v4, %v506_v10  ;;  %v537_v4 = vpack.c.b16 %v534_v3, %v534_v3 }
  0xec   : > { %v1297_v27 = vpop.f32.mrf.mxu0 }
  0xed   : > { %v825_v47 = vadd.f32 -1.0, %v476_v33  ;;  %v452_v55 = vmax.f32 %v809_v40, 0.0  ;;  %v469_v17 = vsub.f32 0.0, %v1297_v27  ;;  %v466_v33 = vsub.f32 0.0, %v1291_v20 }
  0xee   : > { %v799_v40 = vadd.f32 -1.0, %v1291_v20  ;;  %v798_v20 = vadd.f32 -1.0, %v1289_v18 }
  0xef   : > { %v508_v63 = vmax.f32 %v825_v47, 0.0  ;;  %v815_v45 = vadd.f32 -1.0, %v466_v33 }
  0xf0   : > { %v441_v59 = vmax.f32 %v798_v20, 0.0 }
  0xf2   : > { %v416_v26 = vpop.f32.mrf.mxu3 }
  0xf3   : > { %v477_v31 = vsub.f32 0.0, %v416_v26  ;;  %v810_v35 = vadd.f32 -1.0, %v416_v26  ;;  %v504_v26 = vmax.f32 %v821_v8, 0.0 }
  0xf4   : > { %v399_v30 = vpop.f32.mrf.mxu0 }
  0xf5   : > { %v826_v41 = vadd.f32 -1.0, %v477_v31  ;;  %v453_v48 = vmax.f32 %v810_v35, 0.0  ;;  %v470_v5 = vsub.f32 0.0, %v399_v30  ;;  %v803_v11 = vadd.f32 -1.0, %v399_v30 }
  0xf6   : > { %v802_v31 = vadd.f32 -1.0, %v1297_v27  ;;  %v516_v35 = vpack.c.bf16 %v505_v15, %v504_v26 }
  0xf7   : > { %v509_v56 = vmax.f32 %v826_v41, 0.0  ;;  %v462_v0 = vpack.c.bf16 %v453_v48, %v452_v55  ;;  %v819_v21 = vadd.f32 -1.0, %v470_v5  ;;  %v446_v30 = vmax.f32 %v803_v11, 0.0 }
  0xf8   : > { %v800_v41 = vadd.f32 -1.0, %v1293_v23  ;;  %v498_v55 = vmax.f32 %v815_v45, 0.0 }
  0xf9   : > { %v518_v7 = vpack.c.bf16 %v509_v56, %v508_v63  ;;  %v857_v63 = vld [vmem:[#allocation7] sm:$0xff] }
  0xfa   : > { %v419_v28 = vpop.f32.mrf.mxu3 }
  0xfb   : > { %v478_v29 = vsub.f32 0.0, %v419_v28  ;;  %v811_v32 = vadd.f32 -1.0, %v419_v28  ;;  %v460_v28 = vpack.c.bf16 %v449_v9, %v448_v14 }
  0xfc   : > { %v401_v60 = vpop.f32.mrf.mxu0 }
  0xfd   : > { %v827_v36 = vadd.f32 -1.0, %v478_v29  ;;  %v454_v44 = vmax.f32 %v811_v32, 0.0  ;;  %v471_v6 = vsub.f32 0.0, %v401_v60  ;;  %v804_v12 = vadd.f32 -1.0, %v401_v60 }
  0xfe   : > { %v801_v29 = vadd.f32 -1.0, %v1295_v25 }
  0xff   : > { %v510_v51 = vmax.f32 %v827_v36, 0.0  ;;  %v820_v22 = vadd.f32 -1.0, %v471_v6  ;;  %v447_v32 = vmax.f32 %v804_v12, 0.0  ;;  %v817_v36 = vadd.f32 -1.0, %v468_v19 }
 0x100   : > { %v444_v25 = vmax.f32 %v801_v29, 0.0 }
 0x101   : > { %v503_v39 = vmax.f32 %v820_v22, 0.0  ;;  %v459_v27 = vpack.c.bf16 %v447_v32, %v446_v30  ;;  %v500_v47 = vmax.f32 %v817_v36, 0.0 }
 0x102   : > { %v421_v34 = vpop.f32.mrf.mxu3 }
 0x103   : > { %v812_v37 = vadd.f32 -1.0, %v421_v34  ;;  %v479_v38 = vsub.f32 0.0, %v421_v34  ;;  %v467_v34 = vsub.f32 0.0, %v1293_v23  ;;  %v443_v23 = vmax.f32 %v800_v41, 0.0 }
 0x105   : > { %v455_v42 = vmax.f32 %v812_v37, 0.0  ;;  %v828_v43 = vadd.f32 -1.0, %v479_v38  ;;  %v818_v37 = vadd.f32 -1.0, %v469_v17  ;;  %v502_v38 = vmax.f32 %v819_v21, 0.0 }
 0x106   : > { %v816_v46 = vadd.f32 -1.0, %v467_v34 }
 0x107   : > { %v511_v49 = vmax.f32 %v828_v43, 0.0  ;;  %v463_v50 = vpack.c.bf16 %v455_v42, %v454_v44  ;;  %v445_v42 = vmax.f32 %v802_v31, 0.0  ;;  %v464_v43 = vsub.f32 0.0, %v1287_v16 }
 0x108   : > { %v465_v44 = vsub.f32 0.0, %v1289_v18  ;;  %v501_v48 = vmax.f32 %v818_v37, 0.0  ;;  %v499_v56 = vmax.f32 %v816_v46, 0.0 }
 0x109   : > { %541 = vmatpush.bf16.msra.mxu1 %v463_v50  ;;  %v519_v57 = vpack.c.bf16 %v511_v49, %v510_v51  ;;  %v515_v49 = vpack.c.bf16 %v503_v39, %v502_v38  ;;  %v797_v50 = vadd.f32 -1.0, %v1287_v16  ;;  %v442_v51 = vmax.f32 %v799_v40, 0.0 }
 0x10a   : > { %v458_v52 = vpack.c.bf16 %v445_v42, %v444_v25  ;;  %v813_v53 = vadd.f32 -1.0, %v464_v43  ;;  %v814_v54 = vadd.f32 -1.0, %v465_v44  ;;  %v513_v16 = vpack.c.bf16 %v499_v56, %v498_v55 }
 0x10b   : > { %569 = vmatpush.bf16.msra.mxu2 %v519_v57  ;;  %v514_v57 = vpack.c.bf16 %v501_v48, %v500_v47  ;;  %v440_v58 = vmax.f32 %v797_v50, 0.0  ;;  %v457_v60 = vpack.c.bf16 %v443_v23, %v442_v51 }
 0x10c   : > { %v496_v61 = vmax.f32 %v813_v53, 0.0  ;;  %v497_v62 = vmax.f32 %v814_v54, 0.0 }
 0x10d   : > { %542 = vmatpush.bf16.msra.mxu1 %v462_v0  ;;  %v456_v18 = vpack.c.bf16 %v441_v59, %v440_v58 }
 0x10e   : > { %v512_v0 = vpack.c.bf16 %v497_v62, %v496_v61 }
 0x10f   : > { %570 = vmatpush.bf16.msra.mxu2 %v518_v7 }
 0x111   : > { %543 = vmatpush.bf16.msra.mxu1 %v461_v13 }
 0x113   : > { %571 = vmatpush.bf16.msra.mxu2 %v517_v24 }
 0x115   : > { %544 = vmatpush.bf16.msra.mxu1 %v460_v28 }
 0x117   : > { %572 = vmatpush.bf16.msra.mxu2 %v516_v35 }
 0x119   : > { %545 = vmatpush.bf16.msra.mxu1 %v459_v27 }
 0x11b   : > { %573 = vmatpush.bf16.msra.mxu2 %v515_v49 }
 0x11d   : > { %546 = vmatpush.bf16.msra.mxu1 %v458_v52 }
 0x11f   : > { %574 = vmatpush.bf16.msra.mxu2 %v514_v57 }
 0x121   : > { %547 = vmatpush.bf16.msra.mxu1 %v457_v60 }
 0x123   : > { %575 = vmatpush.bf16.msra.mxu2 %v513_v16 }
 0x125   : > { %548 = vmatpush.bf16.msra.mxu1 %v456_v18 }
 0x127   : > { %576 = vmatpush.bf16.msra.mxu2 %v512_v0 }
 0x128   : > { %549 = vmatmul.bf16.vlgmr.msra.gmra.mxu1 %v857_v63 }
 0x12a   : > { %577 = vmatmul.bf16.vlgmr.msra.gmra.mxu2 %v857_v63 }
 0x138   : > { %554 = vmatmul.bf16.gmra.mxu1 %v858_v1 }
 0x13a   : > { %582 = vmatmul.bf16.gmra.mxu2 %v858_v1 }
 0x148   : > { %559 = vmatmul.bf16.gmra.mxu1 %v537_v4 }
 0x14a   : > { %587 = vmatmul.bf16.gmra.mxu2 %v537_v4 }
 0x1a5   : > { %v550_v5 = vpop.f32.mrf.mxu1 }
 0x1a6   : > { %564 = vst [vmem:[%s244_s21] sm:$0xff] %v550_v5 }
 0x1ad   : > { %v552_v6 = vpop.f32.mrf.mxu1  ;;  %v578_v7 = vpop.f32.mrf.mxu2 }
 0x1ae   : > { %565 = vst [vmem:[%s244_s21 + $0x10] sm:$0xff] %v552_v6 }
 0x1af   : > { %592 = vst [vmem:[%s244_s21 + $0x8] sm:$0xff] %v578_v7 }
 0x1b5   : > { %v555_v8 = vpop.f32.mrf.mxu1  ;;  %v580_v9 = vpop.f32.mrf.mxu2 }
 0x1b6   : > { %566 = vst [vmem:[%s244_s21 + $0x20] sm:$0xff] %v555_v8 }
 0x1b7   : > { %593 = vst [vmem:[%s244_s21 + $0x18] sm:$0xff] %v580_v9 }
 0x1bd   : > { %v557_v10 = vpop.f32.mrf.mxu1  ;;  %v583_v11 = vpop.f32.mrf.mxu2 }
 0x1be   : > { %567 = vst [vmem:[%s244_s21 + $0x30] sm:$0xff] %v557_v10 }
 0x1bf   : > { %594 = vst [vmem:[%s244_s21 + $0x28] sm:$0xff] %v583_v11 }
 0x1c5   : > { %v560_v12 = vpop.f32.mrf.mxu1  ;;  %v585_v13 = vpop.f32.mrf.mxu2 }
 0x1c6   : > { %568 = vst [vmem:[%s244_s21 + $0x40] sm:$0xff] %v560_v12 }
 0x1c7   : > { %595 = vst [vmem:[%s244_s21 + $0x38] sm:$0xff] %v585_v13 }
 0x1cd   : > { %v562_v14 = vpop.f32.mrf.mxu1  ;;  %v588_v15 = vpop.f32.mrf.mxu2 }
 0x1ce   : > { %596 = vst [vmem:[%s244_s21 + $0x48] sm:$0xff] %v588_v15 }
 0x1cf   : > { %1073 = shalt.err (!%p1070_p0)
}
 0x1d0   : > { %s1138_s10 = smov 256   ;;  %s1139_s18 = smov 16  }
 0x1d1   : > { %879 = dma.vmem_to_hbm [thread:$0]  (%p1242_p2), %s613_s27, 1280, %s615_s28, %s598_s29, %s1138_s10, %s1138_s10, %s1139_s18  }
 0x1d5   : > { %v590_v19 = vpop.f32.mrf.mxu2 }
 0x1d6 PF: > { %s629_s20 = sand.u32 1, %s1112_s12   ;;  %p893_p4 = pnand %p725_p10, %p1207_p5 }
 0x1d7   : > { %s630_s21 = scalar_lea.sflag [#allocation4], %s629_s20 }
 0x1d8   : > { %p894_p6 = pneg %p893_p4 }
 0x1da   : > { %1107 = dma.done.wait (%p894_p6), %s630_s21, 1280  }
 0x1db   : > { %1109 = vsyncadd (%p894_p6), %s630_s21, 4294966016  ;;  %s20_s17 = sadd.s32 1, %s1132_s17   ;;  %s1359_s12 = smov %s1116_s13 }
 0x1dc   : > { %p17_p8 = scmp.ge.s32.totalorder %s20_s17, 4   ;;  %s1360_s13 = smov %s1120_s14 }
 0x1dd   : > { %s1361_s14 = smov %s1252_s25  ;;  %s1362_s15 = smov %s1128_s16 }
 0x1de   : > { %s1363_s16 = smov %s1365_s9  ;;  %19 = sbr.rel (!%p17_p8) target bundleno = 7 (0x7), region = 86 }
 0x1e3   :  { %636 = vsyncpa [#allocation3], 1 }
 0x1e4   :  { %638 = vsyncpa [#allocation3 + $0x1], 1 }
 0x1e5   :  { %639 = vsyncpa [#allocation6], 1 }
 0x1e6   :  { %640 = vsyncpa [#allocation4], 1 }
 0x1e7   :  { %642 = vsyncpa [#allocation4 + $0x1], 1 }

</bundles_post_ra>
